<compile_context>
chip_gen: v7x
topology: tpu7x:2x2x1
jax: 0.10.0
libtpu: 0.0.40
codegen_flags: <defaults>
</compile_context>

<pallas_src>
import functools

import jax
import jax.numpy as jnp
from jax.experimental import pallas as pl
from jax.experimental.pallas import tpu as pltpu

EPS = 1e-5  # torch.nn.InstanceNorm3d default eps


def _round_up(x, m):
    return (x + m - 1) // m * m


def _vmem_budget_and_limit():
    """Per-generation VMEM sizing (v5e/v6e: 128 MiB, v7x: 64 MiB per TensorCore)."""
    try:
        cap = int(pltpu.get_tpu_info().vmem_capacity_bytes)
    except Exception:  # conservative fallback = v7x-sized VMEM
        cap = 64 * 1024 * 1024
    data_budget = max(8 << 20, min(cap // 3, 40 << 20))
    vmem_limit = min(cap - (16 << 20), data_budget + (16 << 20))
    vmem_limit = max(vmem_limit, data_budget + (4 << 20))
    return data_budget, vmem_limit


def _conv_stats_kernel(x_ref, w_ref, y_ref, sum_ref, sq_ref):
    """Pass 1: y = W @ x tile (bf16 in, f32 acc on MXU) + single-pass sum / sum(y^2)."""
    s = pl.program_id(1)

    @pl.when(s == 0)
    def _():
        sum_ref[...] = jnp.zeros_like(sum_ref)
        sq_ref[...] = jnp.zeros_like(sq_ref)

    y = jnp.dot(w_ref[...], x_ref[0], preferred_element_type=jnp.float32)  # (Cout, TS)
    y_ref[...] = y[None]
    # Padded lanes are zero -> contribute nothing to either statistic.
    sum_ref[...] += jnp.sum(y, axis=-1, keepdims=True)[None]
    sq_ref[...] += jnp.sum(y * y, axis=-1, keepdims=True)[None]


def _normalize_kernel(inv_s, y_ref, sum_ref, sq_ref, o_ref):
    """Pass 2: InstanceNorm3d (affine=False): (y - mean) * rsqrt(var + eps), f32 math."""
    mean = sum_ref[0] * inv_s                       # (Cout, 1)
    var = sq_ref[0] * inv_s - mean * mean           # biased variance, single pass
    var = jnp.maximum(var, 0.0)                     # guard tiny negatives from rounding
    inv_std = jax.lax.rsqrt(var + EPS)
    o_ref[...] = ((y_ref[0] - mean) * inv_std)[None]


def conv_in_3d(x, weight, *, stride=1, padding=0):
    """Forward of _ConvIN3D.

    x:      (N, C_in, D, H, W)  float32
    weight: (C_out, C_in, KD, KH, KW)  float32  (bias=False)
    returns (N, C_out, D_out, H_out, W_out) float32
    """
    N, Cin, D, H, W = x.shape
    Cout, Cin_w, KD, KH, KW = weight.shape
    assert Cin == Cin_w

    Do = (D + 2 * padding - KD) // stride + 1
    Ho = (H + 2 * padding - KH) // stride + 1
    Wo = (W + 2 * padding - KW) // stride + 1
    S = Do * Ho * Wo
    CK = Cin * KD * KH * KW

    xp = x
    if padding:
        xp = jnp.pad(
            x,
            ((0, 0), (0, 0), (padding, padding), (padding, padding), (padding, padding)),
        )

    if (KD, KH, KW) == (1, 1, 1):
        # Module default: 1x1x1 conv -> no im2col, just a (strided) reshape.
        patch = xp[:, :, 0:Do * stride:stride, 0:Ho * stride:stride, 0:Wo * stride:stride]
        xflat = patch.reshape(N, CK, S)
    else:
        # TODO(synk): replace host-side im2col with in-kernel shifted-tap accumulation
        # (halo BlockSpecs) so K>1 does not inflate HBM read traffic by K^3.
        cols = []
        for kd in range(KD):
            for kh in range(KH):
                for kw in range(KW):
                    cols.append(
                        xp[:, :,
                           kd:kd + Do * stride:stride,
                           kh:kh + Ho * stride:stride,
                           kw:kw + Wo * stride:stride]
                    )
        xflat = jnp.stack(cols, axis=2).reshape(N, CK, S)

    wmat = weight.reshape(Cout, CK)  # (Cin outer, (kd,kh,kw) inner) — matches xflat

    # ---- Tile the spatial axis; keep all blocks lane-dense (multiples of 128). ----
    data_budget, vmem_limit = _vmem_budget_and_limit()
    bytes_per_col = max(
        2 * (CK * 2 + Cout * 4),   # pass 1: double-buffered bf16 x tile + f32 y tile
        2 * (2 * Cout * 4),        # pass 2: double-buffered f32 y tile + f32 out tile
    )
    ts = max(128, (data_budget // bytes_per_col) // 128 * 128)
    TS = min(ts, _round_up(S, 128))
    S_pad = _round_up(S, TS)
    n_s = S_pad // TS

    # bf16 inputs (half the HBM reads, MXU-native); f32 accumulation inside the kernel.
    x_in = jnp.pad(xflat, ((0, 0), (0, 0), (0, S_pad - S))).astype(jnp.bfloat16)
    w_in = wmat.astype(jnp.bfloat16)

    cost1 = pl.CostEstimate(
        flops=2 * N * Cout * CK * S_pad,
        transcendentals=0,
        bytes_accessed=int(x_in.size) * 2 + int(w_in.size) * 2
        + N * Cout * (S_pad + 2) * 4,
    )
    y_unnorm, ssum, ssq = pl.pallas_call(
        _conv_stats_kernel,
        out_shape=(
            jax.ShapeDtypeStruct((N, Cout, S_pad), jnp.float32),
            jax.ShapeDtypeStruct((N, Cout, 1), jnp.float32),
            jax.ShapeDtypeStruct((N, Cout, 1), jnp.float32),
        ),
        grid=(N, n_s),
        in_specs=[
            pl.BlockSpec((1, CK, TS), lambda n, s: (n, 0, s)),
            pl.BlockSpec((Cout, CK), lambda n, s: (0, 0)),
        ],
        out_specs=(
            pl.BlockSpec((1, Cout, TS), lambda n, s: (n, 0, s)),
            pl.BlockSpec((1, Cout, 1), lambda n, s: (n, 0, 0)),
            pl.BlockSpec((1, Cout, 1), lambda n, s: (n, 0, 0)),
        ),
        compiler_params=pltpu.CompilerParams(
            dimension_semantics=("parallel", "arbitrary"),
            vmem_limit_bytes=int(vmem_limit),
        ),
        cost_estimate=cost1,
    )(x_in, w_in)

    cost2 = pl.CostEstimate(
        flops=3 * N * Cout * S_pad,
        transcendentals=N * Cout,
        bytes_accessed=2 * N * Cout * S_pad * 4 + 2 * N * Cout * 4,
    )
    out_flat = pl.pallas_call(
        functools.partial(_normalize_kernel, 1.0 / float(S)),
        out_shape=jax.ShapeDtypeStruct((N, Cout, S_pad), jnp.float32),
        grid=(N, n_s),
        in_specs=[
            pl.BlockSpec((1, Cout, TS), lambda n, s: (n, 0, s)),
            pl.BlockSpec((1, Cout, 1), lambda n, s: (n, 0, 0)),
            pl.BlockSpec((1, Cout, 1), lambda n, s: (n, 0, 0)),
        ],
        out_specs=pl.BlockSpec((1, Cout, TS), lambda n, s: (n, 0, s)),
        compiler_params=pltpu.CompilerParams(
            dimension_semantics=("parallel", "arbitrary"),
            vmem_limit_bytes=int(vmem_limit),
        ),
        cost_estimate=cost2,
    )(y_unnorm, ssum, ssq)

    return out_flat[:, :, :S].reshape(N, Cout, Do, Ho, Wo)


def _reference(x, weight, *, stride=1, padding=0):
    # Pure-JAX reference: conv3d (no bias) + InstanceNorm3d (no affine), using the same
    # bf16-input / f32-accumulate precision policy as the kernel.
    y = jax.lax.conv_general_dilated(
        x.astype(jnp.bfloat16), weight.astype(jnp.bfloat16),
        window_strides=(stride, stride, stride),
        padding=[(padding, padding)] * 3,
        dimension_numbers=("NCDHW", "OIDHW", "NCDHW"),
        preferred_element_type=jnp.float32,
    )
    mean = jnp.mean(y, axis=(2, 3, 4), keepdims=True)
    var = jnp.mean(jnp.square(y - mean), axis=(2, 3, 4), keepdims=True)
    return (y - mean) * jax.lax.rsqrt(var + EPS)


if __name__ == "__main__":
    # Deterministic parameters / inputs (synthetic; no checkpoint loading).
    key = jax.random.PRNGKey(0)
    kx, kw = jax.random.split(key)

    batch, in_channels, out_channels = 2, 4, 8
    D = H = W = 8
    kernel_size, stride, padding = 1, 1, 0   # _ConvIN3D defaults

    x = jax.random.normal(kx, (batch, in_channels, D, H, W), dtype=jnp.float32)
    fan_in = in_channels * kernel_size ** 3
    weight = jax.random.normal(
        kw, (out_channels, in_channels, kernel_size, kernel_size, kernel_size),
        dtype=jnp.float32,
    ) * (1.0 / jnp.sqrt(fan_in))

    out = conv_in_3d(x, weight, stride=stride, padding=padding)
    out = jax.block_until_ready(out)

    ref = _reference(x, weight, stride=stride, padding=padding)
    assert out.shape == ref.shape, (out.shape, ref.shape)
    max_err = float(jnp.max(jnp.abs(out - ref)))
    assert jnp.allclose(out, ref, rtol=2e-3, atol=2e-3), f"mismatch vs reference, max_err={max_err}"

    print("KERNEL_OK")
</pallas_src>

<mosaic_0001>
module attributes {stable_mosaic.version = 11 : i64} {
  func.func @_conv_stats_kernel(%arg0: i32, %arg1: i32, %arg2: memref<1x4x512xbf16, #tpu.memory_space<vmem>>, %arg3: memref<8x4xbf16, #tpu.memory_space<vmem>>, %arg4: memref<1x8x512xf32, #tpu.memory_space<vmem>>, %arg5: memref<1x8x1xf32, #tpu.memory_space<vmem>>, %arg6: memref<1x8x1xf32, #tpu.memory_space<vmem>>) attributes {dimension_semantics = [#tpu.dimension_semantics<parallel>, #tpu.dimension_semantics<arbitrary>], iteration_bounds = array<i64: 2, 1>, scalar_prefetch = 0 : i64, scratch_operands = 0 : i64, tpu.core_type = #tpu.core_type<tc>, window_params = [{transform_indices = @transform_0, window_bounds = array<i64: 1, 4, 512>}, {pipeline_mode = #tpu.pipeline_mode<synchronous>, transform_indices = @transform_1, window_bounds = array<i64: 8, 4>}, {transform_indices = @transform_2, window_bounds = array<i64: 1, 8, 512>}, {transform_indices = @transform_3, window_bounds = array<i64: 1, 8, 1>}, {transform_indices = @transform_4, window_bounds = array<i64: 1, 8, 1>}]} {
    %c0_i32 = arith.constant 0 : i32
    %0 = arith.cmpi eq, %arg1, %c0_i32 : i32
    %1 = arith.extui %0 : i1 to i32
    %c0_i32_0 = arith.constant 0 : i32
    %2 = arith.cmpi ne, %1, %c0_i32_0 : i32
    scf.if %2 {
      %cst_22 = arith.constant 0.000000e+00 : f32
      %22 = vector.broadcast %cst_22 : f32 to vector<1x8x1xf32>
      %c0_23 = arith.constant 0 : index
      %c0_24 = arith.constant 0 : index
      %c0_25 = arith.constant 0 : index
      %23 = vector.load %arg5[%c0_23, %c0_24, %c0_25] : memref<1x8x1xf32, #tpu.memory_space<vmem>>, vector<1x8x1xf32>
      tpu.vector_store %arg5[%c0_23, %c0_24, %c0_25], %22 {strides = array<i32>} : memref<1x8x1xf32, #tpu.memory_space<vmem>>, vector<1x8x1xf32>,
      %cst_26 = arith.constant 0.000000e+00 : f32
      %24 = vector.broadcast %cst_26 : f32 to vector<1x8x1xf32>
      %c0_27 = arith.constant 0 : index
      %c0_28 = arith.constant 0 : index
      %c0_29 = arith.constant 0 : index
      %25 = vector.load %arg6[%c0_27, %c0_28, %c0_29] : memref<1x8x1xf32, #tpu.memory_space<vmem>>, vector<1x8x1xf32>
      tpu.vector_store %arg6[%c0_27, %c0_28, %c0_29], %24 {strides = array<i32>} : memref<1x8x1xf32, #tpu.memory_space<vmem>>, vector<1x8x1xf32>,
    } else {
    }
    %c0 = arith.constant 0 : index
    %c0_1 = arith.constant 0 : index
    %3 = vector.load %arg3[%c0, %c0_1] : memref<8x4xbf16, #tpu.memory_space<vmem>>, vector<8x4xbf16>
    %c0_2 = arith.constant 0 : index
    %c0_3 = arith.constant 0 : index
    %c0_4 = arith.constant 0 : index
    %4 = vector.load %arg2[%c0_2, %c0_3, %c0_4] : memref<1x4x512xbf16, #tpu.memory_space<vmem>>, vector<1x4x512xbf16>
    %5 = vector.shape_cast %4 : vector<1x4x512xbf16> to vector<4x512xbf16>
    %cst = arith.constant dense<0.000000e+00> : vector<8x512xf32>
    %6 = tpu.matmul %3, %5, %cst {dimension_numbers = #tpu.dot_dimension_numbers<[1], [0], [0], [1], [0, 0, 1, 1], [], []>} : vector<8x4xbf16>, vector<4x512xbf16>, vector<8x512xf32> -> vector<8x512xf32>
    %7 = vector.shape_cast %6 : vector<8x512xf32> to vector<1x8x512xf32>
    %c0_5 = arith.constant 0 : index
    %c0_6 = arith.constant 0 : index
    %c0_7 = arith.constant 0 : index
    %8 = vector.load %arg4[%c0_5, %c0_6, %c0_7] : memref<1x8x512xf32, #tpu.memory_space<vmem>>, vector<1x8x512xf32>
    tpu.vector_store %arg4[%c0_5, %c0_6, %c0_7], %7 {strides = array<i32>} : memref<1x8x512xf32, #tpu.memory_space<vmem>>, vector<1x8x512xf32>,
    %c0_8 = arith.constant 0 : index
    %c0_9 = arith.constant 0 : index
    %c0_10 = arith.constant 0 : index
    %9 = vector.load %arg5[%c0_8, %c0_9, %c0_10] : memref<1x8x1xf32, #tpu.memory_space<vmem>>, vector<1x8x1xf32>
    %cst_11 = arith.constant dense<0.000000e+00> : vector<8xf32>
    %10 = vector.multi_reduction <add>, %6, %cst_11 [1] : vector<8x512xf32> to vector<8xf32>
    %11 = vector.shape_cast %10 : vector<8xf32> to vector<8x1xf32>
    %12 = vector.shape_cast %11 : vector<8x1xf32> to vector<1x8x1xf32>
    %13 = arith.addf %9, %12 : vector<1x8x1xf32>
    %c0_12 = arith.constant 0 : index
    %c0_13 = arith.constant 0 : index
    %c0_14 = arith.constant 0 : index
    %14 = vector.load %arg5[%c0_12, %c0_13, %c0_14] : memref<1x8x1xf32, #tpu.memory_space<vmem>>, vector<1x8x1xf32>
    tpu.vector_store %arg5[%c0_12, %c0_13, %c0_14], %13 {strides = array<i32>} : memref<1x8x1xf32, #tpu.memory_space<vmem>>, vector<1x8x1xf32>,
    %c0_15 = arith.constant 0 : index
    %c0_16 = arith.constant 0 : index
    %c0_17 = arith.constant 0 : index
    %15 = vector.load %arg6[%c0_15, %c0_16, %c0_17] : memref<1x8x1xf32, #tpu.memory_space<vmem>>, vector<1x8x1xf32>
    %16 = arith.mulf %6, %6 : vector<8x512xf32>
    %cst_18 = arith.constant dense<0.000000e+00> : vector<8xf32>
    %17 = vector.multi_reduction <add>, %16, %cst_18 [1] : vector<8x512xf32> to vector<8xf32>
    %18 = vector.shape_cast %17 : vector<8xf32> to vector<8x1xf32>
    %19 = vector.shape_cast %18 : vector<8x1xf32> to vector<1x8x1xf32>
    %20 = arith.addf %15, %19 : vector<1x8x1xf32>
    %c0_19 = arith.constant 0 : index
    %c0_20 = arith.constant 0 : index
    %c0_21 = arith.constant 0 : index
    %21 = vector.load %arg6[%c0_19, %c0_20, %c0_21] : memref<1x8x1xf32, #tpu.memory_space<vmem>>, vector<1x8x1xf32>
    tpu.vector_store %arg6[%c0_19, %c0_20, %c0_21], %20 {strides = array<i32>} : memref<1x8x1xf32, #tpu.memory_space<vmem>>, vector<1x8x1xf32>,
    return
  }
  func.func @transform_0(%arg0: i32, %arg1: i32) -> (i32, i32, i32) {
    %c0_i32 = arith.constant 0 : i32
    %c0_i32_0 = arith.constant 0 : i32
    return %arg0, %c0_i32, %arg1 : i32, i32, i32
  }
  func.func @transform_1(%arg0: i32, %arg1: i32) -> (i32, i32) {
    %c0_i32 = arith.constant 0 : i32
    %c0_i32_0 = arith.constant 0 : i32
    %c0_i32_1 = arith.constant 0 : i32
    return %c0_i32, %c0_i32_0 : i32, i32
  }
  func.func @transform_2(%arg0: i32, %arg1: i32) -> (i32, i32, i32) {
    %c0_i32 = arith.constant 0 : i32
    %c0_i32_0 = arith.constant 0 : i32
    return %arg0, %c0_i32, %arg1 : i32, i32, i32
  }
  func.func @transform_3(%arg0: i32, %arg1: i32) -> (i32, i32, i32) {
    %c0_i32 = arith.constant 0 : i32
    %c0_i32_0 = arith.constant 0 : i32
    %c0_i32_1 = arith.constant 0 : i32
    return %arg0, %c0_i32, %c0_i32_0 : i32, i32, i32
  }
  func.func @transform_4(%arg0: i32, %arg1: i32) -> (i32, i32, i32) {
    %c0_i32 = arith.constant 0 : i32
    %c0_i32_0 = arith.constant 0 : i32
    %c0_i32_1 = arith.constant 0 : i32
    return %arg0, %c0_i32, %c0_i32_0 : i32, i32, i32
  }
}

</mosaic_0001>

<bundles_post_ra>
// kernel: tpu_custom_call.1
= control target key start
LH: loop header
LB: loop body
LE: loop exit
PB: predicated region body
PF: predicated region fallthrough
CT: control target
= control target key end

     0   :  { %10 = vsyncpa [#allocation3], 0  ;;  %s1009_s0 = inlined_call_operand.hbm [shape: bf16[2,4,512], index: 0, kind: input, shape index: {}]   ;;  %s1010_s1 = inlined_call_operand.vmem [shape: bf16[8,4], index: 1, kind: input, shape index: {}]   ;;  %s1011_s2 = inlined_call_operand.hbm [shape: f32[2,8,512], index: 2, kind: output, shape index: {0}]   ;;  %s1012_s3 = inlined_call_operand.vmem [shape: f32[2,8,1], index: 3, kind: output, shape index: {1}]   ;;  %s1013_s4 = inlined_call_operand.vmem [shape: f32[2,8,1], index: 4, kind: output, shape index: {2}]  }
   0x1   :  { %12 = vsyncpa [#allocation3 + $0x1], 0 }
   0x2   :  { %13 = vsyncpa [#allocation4], 0 }
   0x3   :  { %15 = vsyncpa [#allocation4 + $0x1], 0  ;;  %s803_s15 = smov 0   ;;  %s805_s16 = smov 0  }
   0x4   :  { %s807_s17 = smov 0   ;;  %s809_s18 = smov 0  }
   0x5   :  { %s811_s19 = smov 0   ;;  %s813_s20 = smov 0  }
   0x6 LB: > { %s570_s21 = sadd.s32 4294967295, %s771_s20   ;;  %s571_s22 = sadd.s32 4294967294, %s771_s20   ;;  %s771_s20 = sphi %s813_s20, %s21_s20   ;;  %s767_s19 = sphi %s811_s19, %s1029_s19   ;;  %s763_s18 = sphi %s809_s18, %s1028_s18   ;;  %s759_s17 = sphi %s807_s17, %s1027_s17   ;;  %s755_s16 = sphi %s805_s16, %s1026_s16   ;;  %s751_s15 = sphi %s803_s15, %s1025_s15  }
   0x7   : > { %s33_s23 = sadd.s32 1, %s767_s19  ;;  %s42_s24 = sadd.s32 1, %s759_s17 }
   0x8   : > { %p35_p0 = scmp.ge.s32.totalorder %s33_s23, 2  ;;  %p49_p1 = scmp.ne.s32.totalorder %s759_s17, %s755_s16 }
   0x9   : > { %p50_p2 = scmp.eq.s32.totalorder %s771_s20, 0  ;;  %p55_p3 = scmp.ne.s32.totalorder %s755_s16, %s751_s15 }
   0xa   : > { %s1031_s23 = smov (%p35_p0, %s33_s23), 0  ;;  %p56_p5 = scmp.eq.s32.totalorder %s570_s21, 0 }
   0xb   : > { %p844_p4 = por %p50_p2, %p49_p1  ;;  %s37_s26 = ssub.s32 %s767_s19, %s1031_s23 }
   0xc   : > { %p102_p6 = scmp.eq.s32.totalorder %s570_s21, 1  ;;  %p40_p7 = scmp.eq.s32.totalorder %s37_s26, 0 }
   0xd   : > { %p850_p8 = por %p56_p5, %p55_p3  ;;  %p108_p10 = scmp.eq.s32.totalorder %s571_s22, 1 }
   0xe   : > { %p854_p9 = por %p102_p6, %p49_p1  ;;  %p605_p13 = scmp.lt.s32.totalorder %s771_s20, 2 }
   0xf   : > { %s859_s29 = scalar_select %p40_p7, %s759_s17, %s42_s24  }
  0x10   : > { %s1017_s28 = scalar_select %p854_p9, 1, 0 }
  0x11   : > { %p861_p11 = por %p108_p10, %p55_p3  ;;  %s183_s5 = sand.u32 1, %s759_s17  }
  0x12   : > { %s574_s6 = sshll.u32 %s183_s5, 3  ;;  %s591_s7 = sshll.u32 %s767_s19, 7 }
  0x13   : > { %s1018_s30 = scalar_select %p861_p11, 1, 0 }
  0x14   : > { %s872_s10 = scalar_lea.hbm %s1009_s0, %s591_s7  ;;  %s187_s11 = scalar_lea.vmem [#allocation2], %s574_s6 }
  0x15   : > { %s197_s12 = sshll.u32 %s187_s11, 4  ;;  %p878_p0 = pnand %p605_p13, %p844_p4  ;;  %s874_s12 = int_to_ptr.vmem [resolvable:$true] %s197_s12 }
  0x16   : > { %s184_s14 = scalar_lea.sflag [#allocation3], %s183_s5  ;;  %s659_s21 = scalar_lea.hbm %s872_s10, 128 }
  0x17   : > { %p660_p3 = scmp.ne.s32.totalorder %s872_s10, %s659_s21  ;;  %p661_p5 = pneg %p878_p0 }
  0x18   : > { %s664_s25 = scalar_lea.hbm %s1009_s0, 256  ;;  %p665_p4 = scmp.lt.u32.totalorder %s872_s10, %s1009_s0 }
  0x19   : > { %p662_p6 = pnand %p661_p5, %p660_p3  ;;  %p666_p10 = scmp.lt.u32.totalorder %s664_s25, %s659_s21 }
  0x1a   : > { %p668_p12 = scmp.lt.u32.totalorder %s659_s21, %s872_s10 }
  0x1b   : > { %p663_p7 = pneg %p662_p6  ;;  %p667_p13 = por %p666_p10, %p665_p4 }
  0x1d   : > { %p669_p1 = por %p668_p12, %p667_p13 }
  0x1f   : > { %p670_p2 = pnand %p669_p1, %p663_p7 }
  0x21   : > { %673 = shalt.err (!%p670_p2)
}
  0x22   : > { %s674_s5 = scalar_lea.vmem %s874_s12, 128  ;;  %s773_s7 = smov [#allocation2]  }
  0x23   : > { %p675_p3 = scmp.ne.s32.totalorder %s874_s12, %s674_s5  ;;  %s679_s8 = sshll.u32 %s773_s7, 4  ;;  %s680_s8 = int_to_ptr.vmem [resolvable:$false] %s679_s8 }
  0x24   : > { %s681_s9 = scalar_lea.vmem %s680_s8, 256  ;;  %p682_p9 = scmp.lt.s32.totalorder %s874_s12, %s680_s8 }
  0x25   : > { %p677_p6 = pnand %p675_p3, %p661_p5  ;;  %p683_p4 = scmp.lt.s32.totalorder %s681_s9, %s674_s5 }
  0x27   : > { %p678_p11 = pneg %p677_p6  ;;  %p684_p10 = por %p683_p4, %p682_p9 }
  0x29   : > { %p685_p12 = pnand %p684_p10, %p678_p11 }
  0x2b   : > { %688 = shalt.err (!%p685_p12)
}
  0x2c   : > { %600 = dma.hbm_to_vmem [thread:$0]  (!%p878_p0), %s872_s10, 128, %s874_s12, %s184_s14  }
  0x2d   : > { %p1020_p1 = scmp.lt.s32.totalorder %s771_s20, 3  ;;  %p1021_p2 = scmp.ge.s32.totalorder %s771_s20, 1 }
  0x2f   : > { %p203_p5 = pnand %p1021_p2, %p1020_p1 }
  0x30   : > { %s914_s11 = sand.u32 (!%p203_p5), 1, %s755_s16  }
  0x31   : > { %206 = sbr.rel (%p203_p5) target bundleno = 440 (0x1b8), region = 28  ;;  %s578_s21 = sshll.u32 (!%p203_p5), %s914_s11, 3 }
  0x32   : > { %s209_s22 = scalar_lea.sflag (!%p203_p5), [#allocation3], %s914_s11  ;;  %s212_s24 = scalar_lea.vmem (!%p203_p5), [#allocation2], %s578_s21 }
  0x38   : > { %742 = dma.done.wait (%p850_p8), %s209_s22, 128  }
  0x39   : > { %744 = vsyncadd (%p850_p8), %s209_s22, 4294967168  ;;  %v270_v0 = vlaneseq  ;;  %v774_v1 = vmov 1983009808   ;;  %v775_v3 = vmov 0   ;;  %v264_v7 = vld [vmem:[%s212_s24] sm:$0xff]  ;;  %vm287_vm0 = vcmask 1041408  }
  0x3a   : > { %v268_v2 = vunpack.c.l.s4 %v774_v1  ;;  %332 = vmatprep.mubr.bf16.mxu0 %v775_v3  ;;  %373 = vmatprep.mubr.bf16.mxu1 %v775_v3  ;;  %v266_v9 = vcombine.high %v264_v7, %v264_v7  ;;  %v263_v15 = vld [vmem:[%s1010_s1] sm:$0xf]  ;;  %vm283_vm1 = vcmask 31744   ;;  %p247_p8 = scmp.lt.s32.totalorder %s763_s18, 1  ;;  %vm260_vm2 = vcmask 7168   ;;  %s579_s6 = sshll.u32 %s914_s11, 5 }
  0x3b   : > { %v271_v4 = vshrl.u32 %v270_v0, 7  ;;  %v776_v16 = vmov 0.0   ;;  %s940_s5 = scalar_lea.vmem [#allocation5], %s579_s6  ;;  %s592_s21 = sshll.u32 %s763_s18, 9 }
  0x3c   : > { %v269_v5 = vunpack.c.0.s8 %v268_v2  ;;  %s927_s12 = scalar_select %p247_p8, %s763_s18, 1 }
  0x3d   : > { %s432_s22 = sshll.u32 %s940_s5, 4  ;;  %s960_s10 = scalar_lea.hbm %s1011_s2, %s592_s21  ;;  %s433_s22 = int_to_ptr.vmem [resolvable:$true] %s432_s22 }
  0x3e   : > { %v272_v6 = vsub.s32 %v269_v5, %v271_v4  ;;  %s580_s13 = sshll.u32 %s927_s12, 3  ;;  %s408_s14 = scalar_lea.sflag [#allocation4], %s914_s11 }
  0x3f   : > { %s935_s26 = scalar_lea.vmem %s1012_s3, %s580_s13  ;;  %s951_s9 = scalar_lea.vmem %s1013_s4, %s580_s13 }
  0x40   : > { %v273_v8 = vrot.slane %v264_v7, %v272_v6  ;;  %v280_v12 = vrot.slane %v266_v9, %v272_v6  ;;  %261 = vst.msk [vmem:[%s935_s26] sm:$0xff] %vm260_vm2, %v776_v16  ;;  %262 = vst.msk [vmem:[%s951_s9] sm:$0xff] %vm260_vm2, %v776_v16  ;;  %s689_s25 = scalar_lea.vmem %s433_s22, 512  ;;  %p1022_p11 = scmp.ne.s32.totalorder %s1017_s28, 0 }
  0x41   : > { %p690_p9 = scmp.ne.s32.totalorder %s433_s22, %s689_s25  ;;  %s777_s12 = smov [#allocation5]  }
  0x42   : > { %v281_v10 = vcombine.high %v273_v8, %v273_v8  ;;  %v289_v11 = vsel %vm287_vm0, %v273_v8, 0  ;;  %v282_v13 = vcombine.high %v280_v12, %v280_v12  ;;  %v295_v14 = vsel %vm287_vm0, %v280_v12, 0  ;;  %s693_s13 = sshll.u32 %s777_s12, 4  ;;  %s694_s13 = int_to_ptr.vmem [resolvable:$false] %s693_s13 }
  0x43   : > { %p691_p0 = pnand %p690_p9, %p1022_p11  ;;  %s695_s6 = scalar_lea.vmem %s694_s13, 1024 }
  0x44   : > { %582 = vmatprep.subr.msk.bf16.mxu0 %vm287_vm0, %v281_v10  ;;  %584 = vmatprep.subr.msk.bf16.mxu1 %vm287_vm0, %v282_v13  ;;  %p696_p13 = scmp.lt.s32.totalorder %s433_s22, %s694_s13  ;;  %p697_p3 = scmp.lt.s32.totalorder %s695_s6, %s689_s25 }
  0x45   : > { %301 = vmatpush1.bf16.msra.mxu0 %v289_v11  ;;  %342 = vmatpush1.bf16.msra.mxu1 %v295_v14  ;;  %p692_p7 = pneg %p691_p0 }
  0x46   : > { %p698_p6 = por %p697_p3, %p696_p13 }
  0x48   : > { %583 = vmatmul.mubr.msk.bf16.vlgmr.msra.gmra.mrb[0].mxu0 %vm283_vm1, %v263_v15  ;;  %585 = vmatmul.mubr.msk.bf16.vlgmr.msra.gmra.mrb[0].mxu1 %vm283_vm1, %v263_v15  ;;  %p699_p4 = pnand %p698_p6, %p692_p7 }
 0x11b   : > { %v334_v17 = vpop.f32.mrb[0].mxu0  ;;  %v375_v23 = vpop.f32.mrb[0].mxu1 }
 0x11c   : > { %382 = vst [vmem:[%s940_s5] sm:$0xff] %v334_v17  ;;  %v396_v18 = vmul.f32 %v334_v17, %v334_v17  ;;  %v336_v19 = vpop.f32.mrb[1].mxu0  ;;  %384 = vst [vmem:[%s940_s5 + $0x10] sm:$0xff] %v375_v23  ;;  %v398_v24 = vmul.f32 %v375_v23, %v375_v23  ;;  %v377_v26 = vpop.f32.mrb[1].mxu1 }
 0x11d   : > { %383 = vst [vmem:[%s940_s5 + $0x8] sm:$0xff] %v336_v19  ;;  %v387_v20 = vadd.f32 %v336_v19, %v334_v17  ;;  %v397_v21 = vmul.f32 %v336_v19, %v336_v19  ;;  %v338_v22 = vpop.f32.mrb[2].mxu0  ;;  %385 = vst [vmem:[%s940_s5 + $0x18] sm:$0xff] %v377_v26  ;;  %v379_v27 = vpop.f32.mrb[2].mxu1  ;;  %v399_v32 = vmul.f32 %v377_v26, %v377_v26 }
 0x11e   : > { %v339_v25 = vpop.f32.mrb[3].mxu0  ;;  %v380_v30 = vpop.f32.mrb[3].mxu1 }
 0x11f   : > { %v388_v28 = vadd.f32 %v387_v20, %v375_v23  ;;  %v400_v29 = vadd.f32 %v397_v21, %v396_v18 }
 0x121   : > { %v389_v31 = vadd.f32 %v388_v28, %v377_v26  ;;  %v401_v33 = vadd.f32 %v400_v29, %v398_v24 }
 0x123   : > { %390 = vadd.xlane.f32.xlu0 %v389_v31  ;;  %v402_v34 = vadd.f32 %v401_v33, %v399_v32 }
 0x127   : > { %403 = vadd.xlane.f32.xlu0 %v402_v34 }
 0x128   : > { %702 = shalt.err (!%p699_p4)
}
 0x129   : > { %s703_s18 = scalar_lea.hbm %s960_s10, 512  ;;  %s707_s7 = scalar_lea.hbm %s1011_s2, 1024 }
 0x12a   : > { %p704_p10 = scmp.ne.s32.totalorder %s960_s10, %s703_s18  ;;  %p708_p2 = scmp.lt.u32.totalorder %s960_s10, %s1011_s2 }
 0x12b   : > { %p709_p5 = scmp.lt.u32.totalorder %s707_s7, %s703_s18  ;;  %p711_p9 = scmp.lt.u32.totalorder %s703_s18, %s960_s10 }
 0x12c   : > { %p705_p12 = pnand %p704_p10, %p1022_p11 }
 0x12d   : > { %p710_p8 = por %p709_p5, %p708_p2 }
 0x12e   : > { %p706_p1 = pneg %p705_p12 }
 0x12f   : > { %p712_p0 = por %p711_p9, %p710_p8 }
 0x131   : > { %p713_p7 = pnand %p712_p0, %p706_p1 }
 0x133   : > { %716 = shalt.err (!%p713_p7)
}
 0x134   : > { %595 = dma.vmem_to_hbm [thread:$0]  (%p1022_p11), %s433_s22, 512, %s960_s10, %s408_s14   ;;  %v386_v35 = vld [vmem:[%s935_s26] sm:$0xff] }
 0x135   : > { %v395_v38 = vld [vmem:[%s951_s9] sm:$0xff] }
 0x1b0   : > { %v391_v36 = vpop.xlane.xlu0 %390 }
 0x1b1   : > { %v392_v37 = vadd.f32 %v391_v36, %v386_v35 }
 0x1b3   : > { %394 = vst.msk [vmem:[%s935_s26] sm:$0xff] %vm260_vm2, %v392_v37 }
 0x1b4   : > { %v404_v39 = vpop.xlane.xlu0 %403 }
 0x1b5   : > { %v405_v40 = vadd.f32 %v404_v39, %v395_v38 }
 0x1b7   : > { %406 = vst.msk [vmem:[%s951_s9] sm:$0xff] %vm260_vm2, %v405_v40 }
 0x1b8 PF: > { %s450_s28 = sand.u32 1, %s751_s15   ;;  %p1023_p13 = scmp.ne.s32.totalorder %s1018_s30, 0 }
 0x1b9   : > { %p1024_p3 = scmp.ge.s32.totalorder %s771_s20, 2  ;;  %s451_s24 = scalar_lea.sflag [#allocation4], %s450_s28 }
 0x1bb   : > { %p602_p6 = pnand %p1024_p3, %p1023_p13 }
 0x1bd   : > { %746 = dma.done.wait (!%p602_p6), %s451_s24, 512  }
 0x1be   : > { %748 = vsyncadd (!%p602_p6), %s451_s24, 4294966784  ;;  %s21_s20 = sadd.s32 1, %s771_s20   ;;  %s1025_s15 = smov %s755_s16 }
 0x1bf   : > { %p18_p11 = scmp.ge.s32.totalorder %s21_s20, 4   ;;  %s1026_s16 = smov %s759_s17 }
 0x1c0   : > { %s1027_s17 = smov %s859_s29  ;;  %s1028_s18 = smov %s767_s19 }
 0x1c1   : > { %s1029_s19 = smov %s1031_s23  ;;  %20 = sbr.rel (!%p18_p11) target bundleno = 6 (0x6), region = 101 }
 0x1c8   :  { %470 = vsyncpa [#allocation3], 1 }
 0x1c9   :  { %472 = vsyncpa [#allocation3 + $0x1], 1 }
 0x1ca   :  { %473 = vsyncpa [#allocation4], 1 }
 0x1cb   :  { %475 = vsyncpa [#allocation4 + $0x1], 1 }

</bundles_post_ra>
